<compile_context>
chip_gen: v7x
topology: tpu7x:2x2x1
jax: 0.10.0
libtpu: 0.0.40
codegen_flags: <defaults>
</compile_context>

<pallas_src>
import functools

import jax
import jax.numpy as jnp
from jax.experimental import pallas as pl
from jax.experimental.pallas import tpu as pltpu


def _down_kernel(xa_ref, xb_ref, w_ref, o_ref, *, split_k: bool):
    # xa_ref: (1, TH, 2, Wb, 2*Cin) -- even/odd padded-row pairs for output rows [i*TH, i*TH+TH)
    # xb_ref: (1, 1, 1, Wb, 2*Cin)  -- halo: the single even padded row at a = (i+1)*TH
    # w_ref : (9*Cin, Cl)           -- K order (kh, kw, cin); Cl = Cout (or padded to 128-mult)
    # o_ref : (1, TH, Wout, Cl)
    TH = xa_ref.shape[1]
    Wb = xa_ref.shape[3]
    C = xa_ref.shape[4] // 2
    Wout = Wb - 1
    Cl = o_ref.shape[-1]
    M = TH * Wout

    A = xa_ref[0]                       # (TH, 2, Wb, 2C), compute dtype (no f32 upcast)
    B = xb_ref[0, 0]                    # (1, Wb, 2C)

    r0 = A[:, 0]                        # kh=0 -> padded rows 2*ho
    r1 = A[:, 1]                        # kh=1 -> padded rows 2*ho + 1
    if TH > 1:                          # kh=2 -> padded rows 2*ho + 2 (last row from halo)
        r2 = jnp.concatenate([A[1:, 0], B], axis=0)
    else:
        r2 = B

    # Column parity is folded into channels, so for each kernel-row slab r:
    #   r[:, :Wout, :]  covers taps (kw=0, kw=1) -> K slice [kh*3C, kh*3C + 2C)
    #   r[:, 1:,   :C]  covers tap   kw=2        -> K slice [kh*3C + 2C, (kh+1)*3C)
    # NOTE: the (TH, Wout, k) -> (TH*Wout, k) reshape is free only when Wout % 8 == 0;
    # otherwise it costs one sublane repack per piece (tiling cannot change Wout).
    if split_k:
        # Per-tap accumulated partial dots against contiguous K-slices of the weight;
        # no (M, 9*Cin) patches buffer is ever materialized.
        acc = jnp.zeros((M, Cl), jnp.float32)
        for kh, r in enumerate((r0, r1, r2)):
            pa = r[:, :Wout, :].reshape(M, 2 * C)
            pb = r[:, 1:, :C].reshape(M, C)
            wa = w_ref[pl.ds(kh * 3 * C, 2 * C), :]
            wb = w_ref[pl.ds(kh * 3 * C + 2 * C, C), :]
            acc = acc + jnp.dot(pa, wa, preferred_element_type=jnp.float32)
            acc = acc + jnp.dot(pb, wb, preferred_element_type=jnp.float32)
    else:
        # Tiny-Cin fallback: one GEMM with K = 9*Cin so the MXU lanes are better filled.
        pieces = []
        for r in (r0, r1, r2):
            pieces.append(r[:, :Wout, :])
            pieces.append(r[:, 1:, :C])
        patches = jnp.concatenate(pieces, axis=-1).reshape(M, 9 * C)
        acc = jnp.dot(patches, w_ref[...], preferred_element_type=jnp.float32)

    o_ref[...] = acc.reshape(1, TH, Wout, Cl).astype(o_ref.dtype)


def _vmem_capacity_bytes():
    try:
        cap = getattr(pltpu.get_tpu_info(), "vmem_capacity_bytes", None)
        if cap:
            return int(cap)
    except Exception:
        pass
    return 64 * 1024 * 1024             # conservative default (v7x per-core VMEM)


def down_forward(x_nchw, weight_oihw, *, tm_target=None, use_bf16=False):
    """Down: Conv2d(in, out, kernel_size=3, stride=2, padding=1, bias=False). NCHW in/out."""
    N, Cin, H, W = x_nchw.shape
    Cout, Cin_w, KH, KW = weight_oihw.shape
    assert Cin == Cin_w and KH == 3 and KW == 3
    stride, padding = 2, 1
    Hout = (H + 2 * padding - KH) // stride + 1
    Wout = (W + 2 * padding - KW) // stride + 1

    compute_dtype = jnp.bfloat16 if use_bf16 else x_nchw.dtype
    out_dtype = x_nchw.dtype
    in_b = jnp.dtype(compute_dtype).itemsize
    out_b = jnp.dtype(out_dtype).itemsize

    K = KH * KW * Cin
    Wb = Wout + 1
    split_k = (2 * Cin) >= 128          # per-tap dots only once each K-slice fills the lanes

    # Adaptive output lane width: pad Cout to 128 only when the HBM waste stays <= ~2x.
    Cl = pl.cdiv(Cout, 128) * 128 if Cout >= 64 else Cout

    # ---- generation-aware tile sizing (total per-step VMEM footprint) ----------------
    vmem_cap = _vmem_capacity_bytes()
    budget = int(vmem_cap * 0.45)
    if tm_target is None:
        tm_target = 1024 if vmem_cap >= (96 << 20) else 512   # bigger M tiles on v5e/v6e

    w_bytes = K * Cl * in_b

    def per_step_bytes(th):
        m = th * Wout
        xa = th * 2 * Wb * 2 * Cin * in_b                  # pipelined input block
        xb = Wb * 2 * Cin * in_b                           # halo-row block
        work = 3 * xa                                      # A + r0/r1/r2 in-kernel values
        inter = (2 * m * 2 * Cin if split_k else m * K) * in_b
        acc = m * Cl * 4                                   # f32 accumulator
        out = m * Cl * out_b                               # output block
        return 2 * (xa + xb + out) + w_bytes + work + inter + acc

    TH = max(1, min(Hout, max(1, tm_target // max(Wout, 1))))
    while TH > 1 and per_step_bytes(TH) > budget:
        TH -= 1
    nHb = pl.cdiv(Hout, TH)

    # Keep an even number of parallel grid steps so both v7x TensorCores stay busy.
    if (N * nHb) % 2 == 1 and TH > 1:
        th2 = pl.cdiv(Hout, nHb + 1)
        nHb2 = pl.cdiv(Hout, th2)
        if (N * nHb2) % 2 == 0:
            TH, nHb = th2, nHb2

    vmem_limit = int(min(vmem_cap * 9 // 10, max(4 * per_step_bytes(TH), 32 << 20)))

    # ---- layout-only host glue (no im2col materialization, no M-alignment pad) -------
    Ha = TH * nHb + 1                   # even-phase rows after the row-parity split
    Hp, Wp = 2 * Ha, 2 * Wb

    x = jnp.transpose(x_nchw, (0, 2, 3, 1)).astype(compute_dtype)        # NHWC
    xp = jnp.pad(x, ((0, 0), (padding, Hp - padding - H),
                     (padding, Wp - padding - W), (0, 0)))
    # Free reshape: xs[n, a, p, b, q*Cin + c] == xp[n, 2a + p, 2b + q, c]
    xs = xp.reshape(N, Ha, 2, Wb, 2 * Cin)

    # Weight OIHW -> (KH, KW, Cin, Cout) -> (9*Cin, Cout); lane-pad only when worthwhile.
    w = jnp.transpose(weight_oihw, (2, 3, 1, 0)).reshape(K, Cout)
    if Cl != Cout:
        w = jnp.pad(w, ((0, 0), (0, Cl - Cout)))
    w = w.astype(compute_dtype)

    kernel = functools.partial(_down_kernel, split_k=split_k)
    out = pl.pallas_call(
        kernel,
        out_shape=jax.ShapeDtypeStruct((N, TH * nHb, Wout, Cl), out_dtype),
        grid=(N, nHb),
        in_specs=[
            pl.BlockSpec((1, TH, 2, Wb, 2 * Cin), lambda n, i: (n, i, 0, 0, 0)),
            pl.BlockSpec((1, 1, 1, Wb, 2 * Cin),
                         lambda n, i: (n, TH * (i + 1), 0, 0, 0)),
            pl.BlockSpec((K, Cl), lambda n, i: (0, 0)),     # resident weight
        ],
        out_specs=pl.BlockSpec((1, TH, Wout, Cl), lambda n, i: (n, i, 0, 0)),
        compiler_params=pltpu.CompilerParams(
            dimension_semantics=("parallel", "parallel"),
            vmem_limit_bytes=vmem_limit),
    )(xs, xs, w)

    out = out[:, :Hout, :, :Cout]
    return jnp.transpose(out, (0, 3, 1, 2))                 # back to NCHW


if __name__ == "__main__":
    key = jax.random.PRNGKey(0)
    kx, kw, kx2, kw2 = jax.random.split(key, 4)

    def ref_conv(x, w):
        return jax.lax.conv_general_dilated(
            x, w, window_strides=(2, 2), padding=((1, 1), (1, 1)),
            dimension_numbers=("NCHW", "OIHW", "NCHW"))

    # Small shape consistent with the module (exercises the tiny-Cin concat fallback
    # and the unpadded small-Cout output path).
    N, Cin, H, W = 2, 4, 16, 16
    Cout = 8
    x = jax.random.normal(kx, (N, Cin, H, W), dtype=jnp.float32)
    bound = 1.0 / (Cin * 9) ** 0.5
    weight = jax.random.uniform(kw, (Cout, Cin, 3, 3), jnp.float32, -bound, bound)

    out = jax.block_until_ready(down_forward(x, weight))
    ref = ref_conv(x, weight)
    assert out.shape == ref.shape == (N, Cout, H // 2, W // 2)
    assert jnp.allclose(out, ref, atol=1e-5, rtol=1e-5)

    # Wider channels: exercises the per-tap split-K GEMM path and the 128-lane output.
    N2, Cin2, H2, W2, Cout2 = 1, 64, 16, 16, 128
    x2 = jax.random.normal(kx2, (N2, Cin2, H2, W2), dtype=jnp.float32)
    b2 = 1.0 / (Cin2 * 9) ** 0.5
    w2 = jax.random.uniform(kw2, (Cout2, Cin2, 3, 3), jnp.float32, -b2, b2)
    out2 = jax.block_until_ready(down_forward(x2, w2))
    ref2 = ref_conv(x2, w2)
    assert out2.shape == ref2.shape == (N2, Cout2, H2 // 2, W2 // 2)
    assert jnp.allclose(out2, ref2, atol=1e-4, rtol=1e-4)

    # bf16 MXU-operand path (f32 accumulation) -- looser tolerance.
    out2_bf = jax.block_until_ready(down_forward(x2, w2, use_bf16=True))
    assert out2_bf.shape == ref2.shape
    assert jnp.allclose(out2_bf, ref2, atol=5e-2, rtol=5e-2)

    print("KERNEL_OK")
</pallas_src>

<mosaic_0001>
module attributes {stable_mosaic.version = 11 : i64} {
  func.func @_down_kernel(%arg0: i32, %arg1: i32, %arg2: memref<1x8x2x9x8xf32, #tpu.memory_space<vmem>>, %arg3: memref<1x1x1x9x8xf32, #tpu.memory_space<vmem>>, %arg4: memref<36x8xf32, #tpu.memory_space<vmem>>, %arg5: memref<1x8x8x8xf32, #tpu.memory_space<vmem>>) attributes {dimension_semantics = [#tpu.dimension_semantics<parallel>, #tpu.dimension_semantics<parallel>], iteration_bounds = array<i64: 2, 1>, scalar_prefetch = 0 : i64, scratch_operands = 0 : i64, tpu.core_type = #tpu.core_type<tc>, window_params = [{transform_indices = @transform_0, window_bounds = array<i64: 1, 8, 2, 9, 8>}, {transform_indices = @transform_1, window_bounds = array<i64: 1, 1, 1, 9, 8>}, {pipeline_mode = #tpu.pipeline_mode<synchronous>, transform_indices = @transform_2, window_bounds = array<i64: 36, 8>}, {transform_indices = @transform_3, window_bounds = array<i64: 1, 8, 8, 8>}]} {
    %c0 = arith.constant 0 : index
    %c0_0 = arith.constant 0 : index
    %c0_1 = arith.constant 0 : index
    %c0_2 = arith.constant 0 : index
    %c0_3 = arith.constant 0 : index
    %0 = vector.load %arg2[%c0, %c0_0, %c0_1, %c0_2, %c0_3] : memref<1x8x2x9x8xf32, #tpu.memory_space<vmem>>, vector<1x8x2x9x8xf32>
    %1 = vector.shape_cast %0 : vector<1x8x2x9x8xf32> to vector<8x2x9x8xf32>
    %c0_4 = arith.constant 0 : index
    %c0_5 = arith.constant 0 : index
    %c0_6 = arith.constant 0 : index
    %c0_7 = arith.constant 0 : index
    %c0_8 = arith.constant 0 : index
    %2 = vector.load %arg3[%c0_4, %c0_5, %c0_6, %c0_7, %c0_8] : memref<1x1x1x9x8xf32, #tpu.memory_space<vmem>>, vector<1x1x1x9x8xf32>
    %3 = vector.shape_cast %2 : vector<1x1x1x9x8xf32> to vector<1x9x8xf32>
    %4 = vector.extract_strided_slice %1 {offsets = [0, 0, 0, 0], sizes = [8, 1, 9, 8], strides = [1, 1, 1, 1]} : vector<8x2x9x8xf32> to vector<8x1x9x8xf32>
    %5 = vector.shape_cast %4 : vector<8x1x9x8xf32> to vector<8x9x8xf32>
    %6 = vector.extract_strided_slice %1 {offsets = [0, 1, 0, 0], sizes = [8, 1, 9, 8], strides = [1, 1, 1, 1]} : vector<8x2x9x8xf32> to vector<8x1x9x8xf32>
    %7 = vector.shape_cast %6 : vector<8x1x9x8xf32> to vector<8x9x8xf32>
    %8 = vector.extract_strided_slice %1 {offsets = [1, 0, 0, 0], sizes = [7, 1, 9, 8], strides = [1, 1, 1, 1]} : vector<8x2x9x8xf32> to vector<7x1x9x8xf32>
    %9 = vector.shape_cast %8 : vector<7x1x9x8xf32> to vector<7x9x8xf32>
    %10 = tpu.concatenate %9, %3 in 0 : vector<7x9x8xf32>, vector<1x9x8xf32> -> vector<8x9x8xf32>
    %11 = vector.extract_strided_slice %5 {offsets = [0, 0, 0], sizes = [8, 8, 8], strides = [1, 1, 1]} : vector<8x9x8xf32> to vector<8x8x8xf32>
    %12 = vector.extract_strided_slice %5 {offsets = [0, 1, 0], sizes = [8, 8, 4], strides = [1, 1, 1]} : vector<8x9x8xf32> to vector<8x8x4xf32>
    %13 = vector.extract_strided_slice %7 {offsets = [0, 0, 0], sizes = [8, 8, 8], strides = [1, 1, 1]} : vector<8x9x8xf32> to vector<8x8x8xf32>
    %14 = vector.extract_strided_slice %7 {offsets = [0, 1, 0], sizes = [8, 8, 4], strides = [1, 1, 1]} : vector<8x9x8xf32> to vector<8x8x4xf32>
    %15 = vector.extract_strided_slice %10 {offsets = [0, 0, 0], sizes = [8, 8, 8], strides = [1, 1, 1]} : vector<8x9x8xf32> to vector<8x8x8xf32>
    %16 = vector.extract_strided_slice %10 {offsets = [0, 1, 0], sizes = [8, 8, 4], strides = [1, 1, 1]} : vector<8x9x8xf32> to vector<8x8x4xf32>
    %17 = tpu.concatenate %11, %12, %13, %14, %15, %16 in 2 : vector<8x8x8xf32>, vector<8x8x4xf32>, vector<8x8x8xf32>, vector<8x8x4xf32>, vector<8x8x8xf32>, vector<8x8x4xf32> -> vector<8x8x36xf32>
    %18 = vector.shape_cast %17 : vector<8x8x36xf32> to vector<64x36xf32>
    %c0_9 = arith.constant 0 : index
    %c0_10 = arith.constant 0 : index
    %19 = vector.load %arg4[%c0_9, %c0_10] : memref<36x8xf32, #tpu.memory_space<vmem>>, vector<36x8xf32>
    %cst = arith.constant dense<0.000000e+00> : vector<64x8xf32>
    %20 = tpu.matmul %18, %19, %cst {dimension_numbers = #tpu.dot_dimension_numbers<[1], [0], [0], [1], [0, 0, 1, 1], [], []>} : vector<64x36xf32>, vector<36x8xf32>, vector<64x8xf32> -> vector<64x8xf32>
    %21 = vector.shape_cast %20 : vector<64x8xf32> to vector<1x8x8x8xf32>
    %c0_11 = arith.constant 0 : index
    %c0_12 = arith.constant 0 : index
    %c0_13 = arith.constant 0 : index
    %c0_14 = arith.constant 0 : index
    %22 = vector.load %arg5[%c0_11, %c0_12, %c0_13, %c0_14] : memref<1x8x8x8xf32, #tpu.memory_space<vmem>>, vector<1x8x8x8xf32>
    tpu.vector_store %arg5[%c0_11, %c0_12, %c0_13, %c0_14], %21 {strides = array<i32>} : memref<1x8x8x8xf32, #tpu.memory_space<vmem>>, vector<1x8x8x8xf32>,
    return
  }
  func.func @transform_0(%arg0: i32, %arg1: i32) -> (i32, i32, i32, i32, i32) {
    %c0_i32 = arith.constant 0 : i32
    %c0_i32_0 = arith.constant 0 : i32
    %c0_i32_1 = arith.constant 0 : i32
    %c0_i32_2 = arith.constant 0 : i32
    return %arg0, %arg1, %c0_i32, %c0_i32_0, %c0_i32_1 : i32, i32, i32, i32, i32
  }
  func.func @transform_1(%arg0: i32, %arg1: i32) -> (i32, i32, i32, i32, i32) {
    %c1_i32 = arith.constant 1 : i32
    %0 = arith.addi %arg1, %c1_i32 : i32
    %c8_i32 = arith.constant 8 : i32
    %1 = arith.muli %c8_i32, %0 : i32
    %c0_i32 = arith.constant 0 : i32
    %c0_i32_0 = arith.constant 0 : i32
    %c0_i32_1 = arith.constant 0 : i32
    %c0_i32_2 = arith.constant 0 : i32
    return %arg0, %1, %c0_i32, %c0_i32_0, %c0_i32_1 : i32, i32, i32, i32, i32
  }
  func.func @transform_2(%arg0: i32, %arg1: i32) -> (i32, i32) {
    %c0_i32 = arith.constant 0 : i32
    %c0_i32_0 = arith.constant 0 : i32
    %c0_i32_1 = arith.constant 0 : i32
    return %c0_i32, %c0_i32_0 : i32, i32
  }
  func.func @transform_3(%arg0: i32, %arg1: i32) -> (i32, i32, i32, i32) {
    %c0_i32 = arith.constant 0 : i32
    %c0_i32_0 = arith.constant 0 : i32
    %c0_i32_1 = arith.constant 0 : i32
    return %arg0, %arg1, %c0_i32, %c0_i32_0 : i32, i32, i32, i32
  }
}

</mosaic_0001>

<bundles_post_ra>
// kernel: tpu_custom_call.1
= control target key start
LH: loop header
LB: loop body
LE: loop exit
PB: predicated region body
PF: predicated region fallthrough
CT: control target
= control target key end

     0   :  { %8 = vsyncpa [#allocation3], 0  ;;  %s1423_s0 = inlined_call_operand.vmem [shape: f32[2,9,2,9,8], index: 0, kind: input, shape index: {}]   ;;  %s1424_s1 = inlined_call_operand.vmem [shape: f32[2,9,2,9,8], index: 1, kind: input, shape index: {}]   ;;  %s1425_s2 = inlined_call_operand.vmem [shape: f32[36,8], index: 2, kind: input, shape index: {}]   ;;  %s1426_s3 = inlined_call_operand.hbm [shape: f32[2,8,8,8], index: 3, kind: output, shape index: {}]  }
   0x1   :  { %10 = vsyncpa [#allocation3 + $0x1], 0  ;;  %s1077_s12 = smov 0   ;;  %s1079_s13 = smov 0  }
   0x2   :  { %s1081_s14 = smov 0   ;;  %s1083_s15 = smov 0  }
   0x3   :  { %s1085_s16 = smov 0   ;;  %s1087_s17 = smov 0  }
   0x4 LB: > { %s832_s18 = sadd.s32 4294967295, %s1048_s17   ;;  %s833_s19 = sadd.s32 4294967294, %s1048_s17   ;;  %s1048_s17 = sphi %s1087_s17, %s16_s17   ;;  %s1044_s16 = sphi %s1085_s16, %s1433_s16   ;;  %s1040_s15 = sphi %s1083_s15, %s1432_s15   ;;  %s1036_s14 = sphi %s1081_s14, %s1431_s14   ;;  %s1032_s13 = sphi %s1079_s13, %s1430_s13   ;;  %s1028_s12 = sphi %s1077_s12, %s1429_s12  }
   0x5   : > { %s28_s20 = sadd.s32 1, %s1044_s16  ;;  %s118_s21 = sadd.s32 1, %s1036_s14 }
   0x6   : > { %p30_p0 = scmp.ge.s32.totalorder %s28_s20, 2  ;;  %p128_p1 = scmp.ne.s32.totalorder %s1036_s14, %s1032_s13 }
   0x7   : > { %p129_p2 = scmp.eq.s32.totalorder %s832_s18, 1  ;;  %p134_p3 = scmp.ne.s32.totalorder %s1032_s13, %s1028_s12 }
   0x8   : > { %s1435_s20 = smov (%p30_p0, %s28_s20), 0  ;;  %p135_p5 = scmp.eq.s32.totalorder %s833_s19, 1 }
   0x9   : > { %p1117_p4 = por %p129_p2, %p128_p1  ;;  %s113_s23 = ssub.s32 %s1044_s16, %s1435_s20 }
   0xa   : > { %p836_p6 = scmp.ge.s32.totalorder %s1048_s17, 1  ;;  %p116_p7 = scmp.eq.s32.totalorder %s113_s23, 0 }
   0xb   : > { %p1124_p8 = por %p135_p5, %p134_p3  ;;  %p198_p9 = scmp.lt.s32.totalorder %s1048_s17, 3 }
   0xc   : > { %s1130_s25 = scalar_select %p116_p7, %s1036_s14, %s118_s21  }
   0xd   : > { %p199_p10 = pnand %p836_p6, %p198_p9 }
   0xe   : > { %p251_p11 = scmp.lt.s32.totalorder (!%p199_p10), %s1040_s15, 1  ;;  %s1050_s4 = smov (!%p199_p10), 12   ;;  %vm331_vm0 = vcmask (!%p199_p10), 1046528   ;;  %v566_v53 = vld [vmem:[%s1425_s2] sm:$0xff] (!%p199_p10)  ;;  %v567_v54 = vld [vmem:[%s1425_s2 + $0x8] sm:$0xff] (!%p199_p10)  ;;  %v568_v58 = vld [vmem:[%s1425_s2 + $0x10] sm:$0xff] (!%p199_p10) }
   0xf   : > { %202 = sbr.rel (%p199_p10) target bundleno = 449 (0x1c1), region = 32  ;;  %s1051_s5 = smov (!%p199_p10), 8   ;;  %v892_v56 = vpack.c.bf16 (!%p199_p10), %v567_v54, %v566_v53  ;;  %v569_v59 = vld [vmem:[%s1425_s2 + $0x18] sm:$0xff] (!%p199_p10)  ;;  %vm596_vm1 = vcmask (!%p199_p10), 1043456   ;;  %vm521_vm2 = vcmask (!%p199_p10), 64512   ;;  %vm530_vm3 = vcmask (!%p199_p10), 97280  }
  0x10   : > { %s1052_s10 = smov (!%p199_p10), 20   ;;  %s1053_s11 = smov (!%p199_p10), 24   ;;  %v896_v60 = vpack.c.bf16 (!%p199_p10), %v569_v59, %v568_v58  ;;  %vm539_vm4 = vcmask (!%p199_p10), 162816   ;;  %vm548_vm5 = vcmask (!%p199_p10), 195584   ;;  %vm557_vm6 = vcmask (!%p199_p10), 261120  }
  0x11   : > { %893 = vmatprep.subr.bf16.mxu0 (!%p199_p10), %v892_v56  ;;  %900 = vmatprep.subr.bf16.mxu1 (!%p199_p10), %v892_v56  ;;  %s1054_s8 = smov (!%p199_p10), 32   ;;  %vm571_vm7 = vcmask (!%p199_p10), 293888  }
  0x12   : > { %895 = vmatpush3.bf16.msra.mxu0 (!%p199_p10), %v892_v56  ;;  %903 = vmatpush3.bf16.msra.mxu1 (!%p199_p10), %v892_v56 }
  0x13   : > { %897 = vmatprep.subr.bf16.mxu0 (!%p199_p10), %v896_v60  ;;  %901 = vmatprep.subr.bf16.mxu1 (!%p199_p10), %v896_v60 }
  0x16   : > { %s1134_s26 = scalar_select %p251_p11, %s1040_s15, 1  ;;  %899 = vmatpush3.bf16.msra.mxu0 %v896_v60  ;;  %904 = vmatpush3.bf16.msra.mxu1 %v896_v60 }
  0x18   : > { %s906_s27 = smul.u32 288, %s1134_s26  ;;  %s1055_s26 = smov [#allocation2]  }
  0x1a   : > { %s1142_s30 = scalar_lea.vmem %s1423_s0, %s906_s27  ;;  %s855_s6 = sadd.s32 256, %s906_s27 }
  0x1b   : > { %v299_v0 = vld [vmem:[%s1142_s30 + $0x90] sm:$0xff]  ;;  %v1147_v2 = vld [vmem:[%s1142_s30 + $0x20] sm:$0xff]  ;;  %v286_v3 = vld [vmem:[%s1142_s30 + $0x28] sm:$0x1]  ;;  %s277_s9 = scalar_lea.vmem %s1424_s1, %s855_s6  ;;  %s974_s27 = sshll.u32 %s1055_s26, 4  ;;  %s975_s27 = int_to_ptr.vmem [resolvable:$false] %s974_s27 }
  0x1c   : > { %v283_v1 = vld [vmem:[%s1142_s30 + $0x10] sm:$0xff]  ;;  %396 = vrot.lane.b32.xlu1 %v299_v0, %s1050_s4  ;;  %v335_v4 = vrot.slane %v1147_v2, 1  ;;  %v1154_v5 = vld [vmem:[%s1142_s30] sm:$0xff]  ;;  %v336_v6 = vrot.slane %v286_v3, 1  ;;  %v282_v7 = vld [vmem:[%s1142_s30 + $0x8] sm:$0x1] }
  0x1d   : > { %388 = vrot.lane.b32.xlu0 %v283_v1, %s1050_s4  ;;  %v332_v8 = vrot.slane %v1154_v5, 1  ;;  %v1159_v9 = vld [vmem:[%s1142_s30 + $0xa0] sm:$0xff]  ;;  %v333_v11 = vrot.slane %v282_v7, 1  ;;  %v302_v12 = vld [vmem:[%s1142_s30 + $0xa8] sm:$0x1]  ;;  %v432_v24 = vrot.slane %v299_v0, 1 }
  0x1e   : > { %v1162_v10 = vld [vmem:[%s1142_s30 + $0x80] sm:$0xff]  ;;  %v347_v13 = vrot.slane %v1159_v9, 1  ;;  %v298_v14 = vld [vmem:[%s1142_s30 + $0x88] sm:$0x1]  ;;  %v1168_v15 = vsel %vm331_vm0, %v335_v4, %v336_v6  ;;  %v348_v16 = vrot.slane %v302_v12, 1  ;;  %v303_v25 = vld [vmem:[%s1142_s30 + $0xb0] sm:$0xff] }
  0x1f   : > { %v344_v17 = vrot.slane %v1162_v10, 1  ;;  %v345_v18 = vrot.slane %v298_v14, 1  ;;  %v334_v19 = vsel %vm331_vm0, %v332_v8, %v333_v11  ;;  %v300_v22 = vld [vmem:[%s1142_s30 + $0x98] sm:$0x1]  ;;  %v420_v27 = vrot.slane %v283_v1, 1  ;;  %v287_v28 = vld [vmem:[%s1142_s30 + $0x30] sm:$0xff] }
  0x20   : > { %358 = vrot.lane.b32.xlu1 %v1168_v15, %s1051_s5  ;;  %v1176_v20 = vsel %vm331_vm0, %v347_v13, %v348_v16  ;;  %v284_v23 = vld [vmem:[%s1142_s30 + $0x18] sm:$0x1]  ;;  %v433_v26 = vrot.slane %v300_v22, 1  ;;  %v1197_v32 = vld [vmem:[%s277_s9] sm:$0xff]  ;;  %v435_v33 = vrot.slane %v303_v25, 1  ;;  %v423_v38 = vrot.slane %v287_v28, 1 }
  0x21   : > { %356 = vrot.lane.b32.xlu0 %v334_v19, %s1051_s5  ;;  %v1179_v21 = vsel %vm331_vm0, %v344_v17, %v345_v18  ;;  %v421_v29 = vrot.slane %v284_v23, 1  ;;  %v304_v30 = vld [vmem:[%s1142_s30 + $0xb8] sm:$0x1]  ;;  %v314_v36 = vld [vmem:[%s277_s9 + $0x8] sm:$0x1]  ;;  %v494_v37 = vrot.slane %v1197_v32, 1 }
  0x22   : > { %v288_v31 = vld [vmem:[%s1142_s30 + $0x38] sm:$0x1]  ;;  %v434_v34 = vsel %vm331_vm0, %v432_v24, %v433_v26  ;;  %v436_v35 = vrot.slane %v304_v30, 1  ;;  %v495_v41 = vrot.slane %v314_v36, 1  ;;  %v1211_v45 = vld [vmem:[%s1142_s30 + $0xc0] sm:$0xff]  ;;  %v307_v12 = vld [vmem:[%s1142_s30 + $0xd0] sm:$0xff] }
  0x23   : > { %v422_v39 = vsel %vm331_vm0, %v420_v27, %v421_v29  ;;  %v424_v40 = vrot.slane %v288_v31, 1  ;;  %v306_v46 = vld [vmem:[%s1142_s30 + $0xc8] sm:$0x1]  ;;  %v1215_v47 = vld [vmem:[%s1142_s30 + $0x40] sm:$0xff]  ;;  %v350_v49 = vrot.slane %v1211_v45, 1  ;;  %v291_v13 = vld [vmem:[%s1142_s30 + $0x50] sm:$0xff] }
  0x24   : > { %366 = vrot.lane.b32.xlu1 %v1176_v20, %s1051_s5  ;;  %v1205_v42 = vsel %vm331_vm0, %v494_v37, %v495_v41  ;;  %v437_v43 = vsel %vm331_vm0, %v435_v33, %v436_v35  ;;  %v290_v48 = vld [vmem:[%s1142_s30 + $0x48] sm:$0x1]  ;;  %v351_v50 = vrot.slane %v306_v46, 1  ;;  %v338_v51 = vrot.slane %v1215_v47, 1  ;;  %v1243_v61 = vld [vmem:[%s1142_s30 + $0xe0] sm:$0xff]  ;;  %v311_v17 = vld [vmem:[%s1142_s30 + $0xf0] sm:$0xff] }
  0x25   : > { %364 = vrot.lane.b32.xlu0 %v1179_v21, %s1051_s5  ;;  %v425_v44 = vsel %vm331_vm0, %v423_v38, %v424_v40  ;;  %v339_v52 = vrot.slane %v290_v48, 1  ;;  %v310_v62 = vld [vmem:[%s1142_s30 + $0xe8] sm:$0x1]  ;;  %v1247_v63 = vld [vmem:[%s1142_s30 + $0x60] sm:$0xff]  ;;  %v353_v3 = vrot.slane %v1243_v61, 1  ;;  %v438_v16 = vrot.slane %v307_v12, 1 }
  0x26   : > { %v352_v55 = vsel %vm331_vm0, %v350_v49, %v351_v50  ;;  %v294_v0 = vld [vmem:[%s1142_s30 + $0x68] sm:$0x1]  ;;  %v570_v1 = vld [vmem:[%s1425_s2 + $0x20] sm:$0xf]  ;;  %v354_v4 = vrot.slane %v310_v62, 1  ;;  %v341_v6 = vrot.slane %v1247_v63, 1 }
  0x27   : > { %v340_v57 = vsel %vm331_vm0, %v338_v51, %v339_v52  ;;  %v342_v7 = vrot.slane %v294_v0, 1  ;;  %878 = vmatprep.subr.msk.mxu0 %vm596_vm1, %v570_v1  ;;  %902 = vmatprep.subr.msk.mxu1 %vm596_vm1, %v570_v1  ;;  %v308_v14 = vld [vmem:[%s1142_s30 + $0xd8] sm:$0x1]  ;;  %v426_v19 = vrot.slane %v291_v13, 1  ;;  %s976_s28 = scalar_lea.vmem %s975_s27, 2048 }
  0x28   : > { %398 = vrot.lane.b32.xlu1 %v303_v25, %s1050_s4  ;;  %879 = vmatpush3.msk.msra.mxu0 %vm596_vm1, %v570_v1  ;;  %v355_v8 = vsel %vm331_vm0, %v353_v3, %v354_v4  ;;  %v439_v18 = vrot.slane %v308_v14, 1  ;;  %v312_v23 = vld [vmem:[%s1142_s30 + $0xf8] sm:$0x1]  ;;  %v441_v25 = vrot.slane %v311_v17, 1 }
  0x29   : > { %390 = vrot.lane.b32.xlu0 %v287_v28, %s1050_s4  ;;  %905 = vmatpush3.msk.msra.mxu1 %vm596_vm1, %v570_v1  ;;  %v343_v11 = vsel %vm331_vm0, %v341_v6, %v342_v7  ;;  %v296_v24 = vld [vmem:[%s1142_s30 + $0x78] sm:$0x1]  ;;  %v442_v27 = vrot.slane %v312_v23, 1 }
  0x2a   : > { %v440_v26 = vsel %vm331_vm0, %v438_v16, %v439_v18  ;;  %v430_v30 = vrot.slane %v296_v24, 1 }
  0x2b   : > { %v443_v31 = vsel %vm331_vm0, %v441_v25, %v442_v27 }
  0x2c   : > { %452 = vrot.lane.b32.xlu1 %v434_v34, %s1052_s10 }
  0x2d   : > { %444 = vrot.lane.b32.xlu0 %v422_v39, %s1052_s10 }
  0x30   : > { %454 = vrot.lane.b32.xlu1 %v437_v43, %s1052_s10 }
  0x31   : > { %446 = vrot.lane.b32.xlu0 %v425_v44, %s1052_s10 }
  0x34   : > { %477 = vrot.lane.b32.xlu1 %v1159_v9, %s1053_s11 }
  0x35   : > { %469 = vrot.lane.b32.xlu0 %v1147_v2, %s1053_s11 }
  0x38   : > { %368 = vrot.lane.b32.xlu1 %v352_v55, %s1051_s5 }
  0x39   : > { %360 = vrot.lane.b32.xlu0 %v340_v57, %s1051_s5 }
  0x3c   : > { %479 = vrot.lane.b32.xlu1 %v1211_v45, %s1053_s11 }
  0x3d   : > { %471 = vrot.lane.b32.xlu0 %v1215_v47, %s1053_s11 }
  0x40   : > { %505 = vrot.lane.b32.xlu1 %v1176_v20, %s1054_s8  ;;  %v295_v20 = vld [vmem:[%s1142_s30 + $0x70] sm:$0xff] }
  0x41   : > { %497 = vrot.lane.b32.xlu0 %v1168_v15, %s1054_s8  ;;  %v292_v15 = vld [vmem:[%s1142_s30 + $0x58] sm:$0x1]  ;;  %v429_v28 = vrot.slane %v295_v20, 1  ;;  %s241_s30 = sand.u32 1, %s1032_s13  }
  0x42   : > { %v427_v22 = vrot.slane %v292_v15, 1 }
  0x43   : > { %v431_v33 = vsel %vm331_vm0, %v429_v28, %v430_v30 }
  0x44   : > { %370 = vrot.lane.b32.xlu1 %v355_v8, %s1051_s5  ;;  %v428_v29 = vsel %vm331_vm0, %v426_v19, %v427_v22 }
  0x45   : > { %362 = vrot.lane.b32.xlu0 %v343_v11, %s1051_s5 }
  0x48   : > { %400 = vrot.lane.b32.xlu1 %v307_v12, %s1050_s4 }
  0x49   : > { %392 = vrot.lane.b32.xlu0 %v291_v13, %s1050_s4 }
  0x4c   : > { %507 = vrot.lane.b32.xlu1 %v352_v55, %s1054_s8 }
  0x4d   : > { %499 = vrot.lane.b32.xlu0 %v340_v57, %s1054_s8 }
  0x50   : > { %402 = vrot.lane.b32.xlu1 %v311_v17, %s1050_s4 }
  0x51   : > { %394 = vrot.lane.b32.xlu0 %v295_v20, %s1050_s4  ;;  %s837_s4 = sshll.u32 %s241_s30, 6 }
  0x52   : > { %s243_s9 = scalar_lea.vmem [#allocation2], %s837_s4 }
  0x54   : > { %456 = vrot.lane.b32.xlu1 %v440_v26, %s1052_s10 }
  0x55   : > { %448 = vrot.lane.b32.xlu0 %v428_v29, %s1052_s10 }
  0x58   : > { %458 = vrot.lane.b32.xlu1 %v443_v31, %s1052_s10 }
  0x59   : > { %450 = vrot.lane.b32.xlu0 %v431_v33, %s1052_s10  ;;  %s856_s10 = sshll.u32 %s1040_s15, 10  ;;  %s1376_s15 = scalar_lea.sflag [#allocation3], %s241_s30 }
  0x5a   : > { %s1368_s21 = scalar_lea.hbm %s1426_s3, %s856_s10 }
  0x5c   : > { %481 = vrot.lane.b32.xlu1 %v1243_v61, %s1053_s11 }
  0x5d   : > { %473 = vrot.lane.b32.xlu0 %v1247_v63, %s1053_s11 }
  0x60   : > { %483 = vrot.lane.b32.xlu1 %v1197_v32, %s1053_s11 }
  0x61   : > { %475 = vrot.lane.b32.xlu0 %v1162_v10, %s1053_s11  ;;  %s729_s11 = sshll.u32 %s243_s9, 4  ;;  %s1371_s11 = int_to_ptr.vmem [resolvable:$true] %s729_s11 }
  0x62   : > { %s970_s23 = scalar_lea.vmem %s1371_s11, 1024  ;;  %p977_p1 = scmp.lt.s32.totalorder %s1371_s11, %s975_s27 }
  0x63   : > { %p971_p12 = scmp.ne.s32.totalorder %s1371_s11, %s970_s23  ;;  %p978_p2 = scmp.lt.s32.totalorder %s976_s28, %s970_s23 }
  0x64   : > { %509 = vrot.lane.b32.xlu1 %v355_v8, %s1054_s8 }
  0x65   : > { %501 = vrot.lane.b32.xlu0 %v343_v11, %s1054_s8  ;;  %p972_p13 = pnand %p971_p12, %p1117_p4  ;;  %p979_p3 = por %p978_p2, %p977_p1 }
  0x67   : > { %p973_p0 = pneg %p972_p13 }
  0x68   : > { %511 = vrot.lane.b32.xlu1 %v1205_v42, %s1054_s8 }
  0x69   : > { %503 = vrot.lane.b32.xlu0 %v1179_v21, %s1054_s8  ;;  %p980_p5 = pnand %p979_p3, %p973_p0 }
  0x8e   : > { %v397_v34 = vpop.permute.xlu1 %396 }
  0x8f   : > { %v389_v35 = vpop.permute.xlu0 %388 }
  0x92   : > { %v359_v36 = vpop.permute.xlu1 %358 }
  0x93   : > { %v357_v37 = vpop.permute.xlu0 %356  ;;  %v523_v7 = vsel %vm521_vm2, %v1147_v2, %v359_v36 }
  0x94   : > { %v522_v51 = vsel %vm521_vm2, %v1154_v5, %v357_v37 }
  0x95   : > { %v531_v56 = vsel %vm530_vm3, %v522_v51, %v389_v35 }
  0x96   : > { %v367_v38 = vpop.permute.xlu1 %366 }
  0x97   : > { %v365_v39 = vpop.permute.xlu0 %364  ;;  %v527_v4 = vsel %vm521_vm2, %v1159_v9, %v367_v38 }
  0x98   : > { %v526_v21 = vsel %vm521_vm2, %v1162_v10, %v365_v39 }
  0x99   : > { %v535_v54 = vsel %vm530_vm3, %v526_v21, %v397_v34 }
  0x9a   : > { %v399_v32 = vpop.permute.xlu1 %398 }
  0x9b   : > { %v391_v40 = vpop.permute.xlu0 %390  ;;  %v536_v8 = vsel %vm530_vm3, %v527_v4, %v399_v32 }
  0x9c   : > { %v532_v11 = vsel %vm530_vm3, %v523_v7, %v391_v40 }
  0x9e   : > { %v453_v41 = vpop.permute.xlu1 %452 }
  0x9f   : > { %v445_v43 = vpop.permute.xlu0 %444  ;;  %v544_v55 = vsel %vm539_vm4, %v535_v54, %v453_v41 }
  0xa0   : > { %v540_v57 = vsel %vm539_vm4, %v531_v56, %v445_v43 }
  0xa2   : > { %v455_v44 = vpop.permute.xlu1 %454 }
  0xa3   : > { %v447_v46 = vpop.permute.xlu0 %446  ;;  %v545_v12 = vsel %vm539_vm4, %v536_v8, %v455_v44 }
  0xa4   : > { %v541_v13 = vsel %vm539_vm4, %v532_v11, %v447_v46 }
  0xa6   : > { %v478_v48 = vpop.permute.xlu1 %477 }
  0xa7   : > { %v470_v49 = vpop.permute.xlu0 %469  ;;  %v553_v10 = vsel %vm548_vm5, %v544_v55, %v478_v48 }
  0xa8   : > { %v549_v5 = vsel %vm548_vm5, %v540_v57, %v470_v49 }
  0xaa   : > { %v369_v50 = vpop.permute.xlu1 %368 }
  0xab   : > { %v361_v42 = vpop.permute.xlu0 %360  ;;  %v528_v28 = vsel %vm521_vm2, %v1211_v45, %v369_v50 }
  0xac   : > { %v524_v30 = vsel %vm521_vm2, %v1215_v47, %v361_v42 }
  0xae   : > { %v480_v52 = vpop.permute.xlu1 %479 }
  0xaf   : > { %v472_v53 = vpop.permute.xlu0 %471  ;;  %v554_v14 = vsel %vm548_vm5, %v545_v12, %v480_v52 }
  0xb0   : > { %v550_v16 = vsel %vm548_vm5, %v541_v13, %v472_v53 }
  0xb2   : > { %v506_v58 = vpop.permute.xlu1 %505 }
  0xb3   : > { %v498_v59 = vpop.permute.xlu0 %497  ;;  %v562_v60 = vsel %vm557_vm6, %v553_v10, %v506_v58 }
  0xb4   : > { %v558_v62 = vsel %vm557_vm6, %v549_v5, %v498_v59  ;;  %886 = vmatprep.mubr.msk.f32.mxu1 %vm571_vm7, %v562_v60 }
  0xb5   : > { %880 = vmatprep.mubr.msk.f32.mxu0 %vm571_vm7, %v558_v62 }
  0xb6   : > { %v371_v0 = vpop.permute.xlu1 %370 }
  0xb7   : > { %v363_v1 = vpop.permute.xlu0 %362  ;;  %v529_v38 = vsel %vm521_vm2, %v1243_v61, %v371_v0 }
  0xb8   : > { %v525_v47 = vsel %vm521_vm2, %v1247_v63, %v363_v1 }
  0xba   : > { %v401_v3 = vpop.permute.xlu1 %400 }
  0xbb   : > { %v393_v6 = vpop.permute.xlu0 %392  ;;  %v537_v31 = vsel %vm530_vm3, %v528_v28, %v401_v3 }
  0xbc   : > { %v533_v33 = vsel %vm530_vm3, %v524_v30, %v393_v6 }
  0xbe   : > { %v508_v15 = vpop.permute.xlu1 %507 }
  0xbf   : > { %v563_v17 = vsel %vm557_vm6, %v554_v14, %v508_v15  ;;  %v500_v9 = vpop.permute.xlu0 %499 }
  0xc0   : > { %v559_v18 = vsel %vm557_vm6, %v550_v16, %v500_v9  ;;  %887 = vmatmul.mubr.msk.f32.vlgmr.msra.gmra.mrb[0].mxu1 %vm571_vm7, %v563_v17 }
  0xc1   : > { %881 = vmatmul.mubr.msk.f32.vlgmr.msra.gmra.mrb[0].mxu0 %vm571_vm7, %v559_v18 }
  0xc2   : > { %v403_v2 = vpop.permute.xlu1 %402 }
  0xc3   : > { %v395_v19 = vpop.permute.xlu0 %394  ;;  %v538_v40 = vsel %vm530_vm3, %v529_v38, %v403_v2 }
  0xc4   : > { %v534_v43 = vsel %vm530_vm3, %v525_v47, %v395_v19 }
  0xc6   : > { %v457_v20 = vpop.permute.xlu1 %456 }
  0xc7   : > { %v449_v22 = vpop.permute.xlu0 %448  ;;  %v546_v34 = vsel %vm539_vm4, %v537_v31, %v457_v20 }
  0xc8   : > { %v542_v35 = vsel %vm539_vm4, %v533_v33, %v449_v22 }
  0xca   : > { %v459_v23 = vpop.permute.xlu1 %458 }
  0xcb   : > { %v451_v24 = vpop.permute.xlu0 %450  ;;  %v547_v44 = vsel %vm539_vm4, %v538_v40, %v459_v23 }
  0xcc   : > { %v543_v61 = vsel %vm539_vm4, %v534_v43, %v451_v24 }
  0xce   : > { %v482_v25 = vpop.permute.xlu1 %481 }
  0xcf   : > { %v474_v26 = vpop.permute.xlu0 %473  ;;  %v555_v36 = vsel %vm548_vm5, %v546_v34, %v482_v25 }
  0xd0   : > { %v551_v45 = vsel %vm548_vm5, %v542_v35, %v474_v26 }
  0xd2   : > { %v484_v27 = vpop.permute.xlu1 %483 }
  0xd3   : > { %v476_v29 = vpop.permute.xlu0 %475  ;;  %v556_v46 = vsel %vm548_vm5, %v547_v44, %v484_v27 }
  0xd4   : > { %v552_v63 = vsel %vm548_vm5, %v543_v61, %v476_v29 }
  0xd6   : > { %v510_v37 = vpop.permute.xlu1 %509 }
  0xd7   : > { %v564_v39 = vsel %vm557_vm6, %v555_v36, %v510_v37  ;;  %v502_v32 = vpop.permute.xlu0 %501 }
  0xd8   : > { %v560_v41 = vsel %vm557_vm6, %v551_v45, %v502_v32  ;;  %889 = vmatprep.mubr.msk.f32.mxu1 %vm571_vm7, %v564_v39 }
  0xd9   : > { %883 = vmatprep.mubr.msk.f32.mxu0 %vm571_vm7, %v560_v41 }
  0xda   : > { %v512_v48 = vpop.permute.xlu1 %511 }
  0xdb   : > { %v565_v49 = vsel %vm557_vm6, %v556_v46, %v512_v48  ;;  %v504_v50 = vpop.permute.xlu0 %503 }
  0xdc   : > { %v561_v42 = vsel %vm557_vm6, %v552_v63, %v504_v50  ;;  %890 = vmatmul.mubr.msk.f32.gmra.mrb[2].mxu1 %vm571_vm7, %v565_v49 }
  0xdd   : > { %884 = vmatmul.mubr.msk.f32.gmra.mrb[2].mxu0 %vm571_vm7, %v561_v42 }
 0x193   : > { %v888_v21 = vpop.f32.mrb[0].mxu1 }
 0x194   : > { %v882_v51 = vpop.f32.mrb[0].mxu0  ;;  %710 = vst.msk [vmem:[%s243_s9 + $0x28] sm:$0xff] %vm521_vm2, %v888_v21  ;;  %v686_v52 = vpop.f32.mrb[1].mxu1 }
 0x195   : > { %706 = vst.msk [vmem:[%s243_s9 + $0x8] sm:$0xff] %vm521_vm2, %v882_v51  ;;  %v666_v53 = vpop.f32.mrb[1].mxu0  ;;  %709 = vst.msk [vmem:[%s243_s9 + $0x20] sm:$0xff] %vm521_vm2, %v686_v52 }
 0x196   : > { %705 = vst.msk [vmem:[%s243_s9] sm:$0xff] %vm521_vm2, %v666_v53 }
 0x1af   : > { %v891_v54 = vpop.f32.mrb[2].mxu1 }
 0x1b0   : > { %v885_v55 = vpop.f32.mrb[2].mxu0  ;;  %712 = vst.msk [vmem:[%s243_s9 + $0x38] sm:$0xff] %vm521_vm2, %v891_v54  ;;  %v696_v56 = vpop.f32.mrb[3].mxu1 }
 0x1b1   : > { %708 = vst.msk [vmem:[%s243_s9 + $0x18] sm:$0xff] %vm521_vm2, %v885_v55  ;;  %v676_v57 = vpop.f32.mrb[3].mxu0  ;;  %711 = vst.msk [vmem:[%s243_s9 + $0x30] sm:$0xff] %vm521_vm2, %v696_v56 }
 0x1b2   : > { %707 = vst.msk [vmem:[%s243_s9 + $0x10] sm:$0xff] %vm521_vm2, %v676_v57 }
 0x1b3   : > { %983 = shalt.err (!%p980_p5)
}
 0x1b4   : > { %s984_s29 = scalar_lea.hbm %s1368_s21, 1024  ;;  %s988_s8 = scalar_lea.hbm %s1426_s3, 2048 }
 0x1b5   : > { %p985_p6 = scmp.ne.s32.totalorder %s1368_s21, %s984_s29  ;;  %p989_p10 = scmp.lt.u32.totalorder %s1368_s21, %s1426_s3 }
 0x1b6   : > { %p990_p11 = scmp.lt.u32.totalorder %s988_s8, %s984_s29  ;;  %p992_p13 = scmp.lt.u32.totalorder %s984_s29, %s1368_s21 }
 0x1b7   : > { %p986_p7 = pnand %p985_p6, %p1117_p4 }
 0x1b8   : > { %p991_p12 = por %p990_p11, %p989_p10 }
 0x1b9   : > { %p987_p9 = pneg %p986_p7 }
 0x1ba   : > { %p993_p0 = por %p992_p13, %p991_p12 }
 0x1bc   : > { %p994_p1 = pnand %p993_p0, %p987_p9 }
 0x1be   : > { %997 = shalt.err (!%p994_p1)
}
 0x1bf   : > { %s1056_s9 = smov 128  }
 0x1c0   : > { %908 = dma.vmem_to_hbm [thread:$0]  (%p1117_p4), %s1371_s11, 1024, %s1368_s21, %s1376_s15, %s1056_s9, %s1056_s9, %s1051_s5  }
 0x1c1 PF: > { %p915_p2 = scmp.ge.s32.totalorder %s1048_s17, 2  ;;  %s744_s10 = sand.u32 1, %s1028_s12  }
 0x1c2   : > { %s745_s18 = scalar_lea.sflag [#allocation3], %s744_s10 }
 0x1c3   : > { %p911_p3 = pnand %p915_p2, %p1124_p8 }
 0x1c5   : > { %1023 = dma.done.wait (!%p911_p3), %s745_s18, 1024  }
 0x1c6   : > { %1025 = vsyncadd (!%p911_p3), %s745_s18, 4294966272  ;;  %s16_s17 = sadd.s32 1, %s1048_s17   ;;  %s1429_s12 = smov %s1032_s13 }
 0x1c7   : > { %p13_p5 = scmp.ge.s32.totalorder %s16_s17, 4   ;;  %s1430_s13 = smov %s1036_s14 }
 0x1c8   : > { %s1431_s14 = smov %s1130_s25  ;;  %s1432_s15 = smov %s1044_s16 }
 0x1c9   : > { %s1433_s16 = smov %s1435_s20  ;;  %15 = sbr.rel (!%p13_p5) target bundleno = 4 (0x4), region = 70 }
 0x1d0   :  { %750 = vsyncpa [#allocation3], 1 }
 0x1d1   :  { %752 = vsyncpa [#allocation3 + $0x1], 1 }

</bundles_post_ra>
